<compile_context>
chip_gen: v7x
topology: tpu7x:2x2x1
jax: 0.10.0
libtpu: 0.0.40
codegen_flags: <defaults>
</compile_context>

<pallas_src>
import jax
import jax.numpy as jnp
from jax.experimental import pallas as pl
from jax.experimental.pallas import tpu as pltpu


def _round_up(x, m):
    return ((x + m - 1) // m) * m


def _td_linear_kernel(x_ref, w_ref, b_ref, o_ref):
    # x_ref: (tm, D_in), w_ref: (D_in, tn), b_ref: (1, tn), o_ref: (tm, tn)
    acc = jnp.dot(x_ref[...], w_ref[...], preferred_element_type=jnp.float32)
    o_ref[...] = (acc + b_ref[...]).astype(o_ref.dtype)


def time_distributed_conv1x1(x, weight, bias, *, tm=512, max_tn=512):
    """x: (B, S, D_in); weight: (D_out, D_in, 1); bias: (D_out,)."""
    B, S, D_in = x.shape
    D_out = weight.shape[0]
    M = B * S
    itemsize = jnp.dtype(x.dtype).itemsize

    # ---- lane (N) tiling: pad D_out to a multiple of 128 for unmasked stores.
    D_out_pad = _round_up(D_out, 128)
    tn = min(D_out_pad, max_tn)
    while D_out_pad % tn != 0:  # keep tn a multiple of 128 dividing D_out_pad
        tn -= 128

    # ---- row (M) tiling: big tiles; ragged last block handled by Pallas.
    tm_eff = min(tm, _round_up(M, 8))  # sublane-aligned, never larger than needed

    # Shrink the row tile if the (double-buffered) tile set would blow VMEM
    # (v7x has 64 MiB per TC; stay well under it).
    def _vmem_need(t):
        return 2 * (t * D_in + D_in * tn + tn + t * tn) * itemsize

    vmem_budget = 48 * 1024 * 1024
    while _vmem_need(tm_eff) > vmem_budget and tm_eff > 64:
        tm_eff = _round_up(tm_eff // 2, 8)

    grid = (pl.cdiv(M, tm_eff), D_out_pad // tn)

    # ---- layout plumbing in the wrapper (absorbs the b<->d transposes).
    x2d = x.reshape(M, D_in)
    w2d = weight[:, :, 0].T  # (D_in, D_out)
    b2d = bias.reshape(1, D_out)
    if D_out_pad != D_out:
        w2d = jnp.pad(w2d, ((0, 0), (0, D_out_pad - D_out)))
        b2d = jnp.pad(b2d, ((0, 0), (0, D_out_pad - D_out)))

    vmem_limit = int(min(max(_vmem_need(tm_eff) + (8 << 20), 32 << 20), 64 << 20))

    cost = pl.CostEstimate(
        flops=2 * M * D_in * D_out_pad,
        transcendentals=0,
        bytes_accessed=(M * D_in + D_in * D_out_pad + D_out_pad
                        + M * D_out_pad) * itemsize,
    )

    out2d = pl.pallas_call(
        _td_linear_kernel,
        out_shape=jax.ShapeDtypeStruct((M, D_out_pad), x.dtype),
        grid_spec=pltpu.PrefetchScalarGridSpec(
            num_scalar_prefetch=0,
            grid=grid,
            in_specs=[
                pl.BlockSpec((tm_eff, D_in), lambda i, j: (i, 0)),
                pl.BlockSpec((D_in, tn), lambda i, j: (0, j)),
                pl.BlockSpec((1, tn), lambda i, j: (0, j)),
            ],
            out_specs=pl.BlockSpec((tm_eff, tn), lambda i, j: (i, j)),
        ),
        compiler_params=pltpu.CompilerParams(
            dimension_semantics=("parallel", "parallel"),
            vmem_limit_bytes=vmem_limit,
        ),
        cost_estimate=cost,
    )(x2d, w2d, b2d)

    return out2d[:, :D_out].reshape(B, S, D_out)


if __name__ == "__main__":
    # Small shapes consistent with the forward: (batch, seq, features)
    B, S, D_in, D_out = 2, 8, 32, 32

    key = jax.random.PRNGKey(0)
    kx, kw, kb = jax.random.split(key, 3)

    x = jax.random.normal(kx, (B, S, D_in), dtype=jnp.float32)

    # Deterministic PyTorch-style Conv1d init: U(-sqrt(k), sqrt(k)), k = 1/(D_in*kernel)
    bound = (1.0 / D_in) ** 0.5
    weight = jax.random.uniform(kw, (D_out, D_in, 1), jnp.float32, -bound, bound)
    bias = jax.random.uniform(kb, (D_out,), jnp.float32, -bound, bound)

    out = jax.jit(time_distributed_conv1x1)(x, weight, bias)
    out = jax.block_until_ready(out)

    # Reference (plain JAX, mirrors the PyTorch transpose->conv1d(k=1)->transpose path)
    ref = jnp.einsum("bsd,od->bso", x, weight[:, :, 0]) + bias[None, None, :]
    assert out.shape == (B, S, D_out)
    assert jnp.allclose(out, ref, atol=1e-5, rtol=1e-5)

    print("KERNEL_OK")
</pallas_src>

<mosaic_0001>
module attributes {stable_mosaic.version = 11 : i64} {
  func.func @_td_linear_kernel(%arg0: i32, %arg1: i32, %arg2: memref<16x32xf32, #tpu.memory_space<vmem>>, %arg3: memref<32x128xf32, #tpu.memory_space<vmem>>, %arg4: memref<1x128xf32, #tpu.memory_space<vmem>>, %arg5: memref<16x128xf32, #tpu.memory_space<vmem>>) attributes {dimension_semantics = [#tpu.dimension_semantics<parallel>, #tpu.dimension_semantics<parallel>], iteration_bounds = array<i64: 1, 1>, scalar_prefetch = 0 : i64, scratch_operands = 0 : i64, tpu.core_type = #tpu.core_type<tc>, window_params = [{transform_indices = @transform_0, window_bounds = array<i64: 16, 32>}, {transform_indices = @transform_1, window_bounds = array<i64: 32, 128>}, {transform_indices = @transform_2, window_bounds = array<i64: 1, 128>}, {transform_indices = @transform_3, window_bounds = array<i64: 16, 128>}]} {
    %c0 = arith.constant 0 : index
    %c0_0 = arith.constant 0 : index
    %0 = vector.load %arg2[%c0, %c0_0] : memref<16x32xf32, #tpu.memory_space<vmem>>, vector<16x32xf32>
    %c0_1 = arith.constant 0 : index
    %c0_2 = arith.constant 0 : index
    %1 = vector.load %arg3[%c0_1, %c0_2] : memref<32x128xf32, #tpu.memory_space<vmem>>, vector<32x128xf32>
    %cst = arith.constant dense<0.000000e+00> : vector<16x128xf32>
    %2 = tpu.matmul %0, %1, %cst {dimension_numbers = #tpu.dot_dimension_numbers<[1], [0], [0], [1], [0, 0, 1, 1], [], []>} : vector<16x32xf32>, vector<32x128xf32>, vector<16x128xf32> -> vector<16x128xf32>
    %c0_3 = arith.constant 0 : index
    %c0_4 = arith.constant 0 : index
    %3 = vector.load %arg4[%c0_3, %c0_4] : memref<1x128xf32, #tpu.memory_space<vmem>>, vector<1x128xf32>
    %4 = vector.broadcast %3 : vector<1x128xf32> to vector<16x128xf32>
    %5 = arith.addf %2, %4 : vector<16x128xf32>
    %c0_5 = arith.constant 0 : index
    %c0_6 = arith.constant 0 : index
    %6 = vector.load %arg5[%c0_5, %c0_6] : memref<16x128xf32, #tpu.memory_space<vmem>>, vector<16x128xf32>
    tpu.vector_store %arg5[%c0_5, %c0_6], %5 {strides = array<i32>} : memref<16x128xf32, #tpu.memory_space<vmem>>, vector<16x128xf32>,
    return
  }
  func.func @transform_0(%arg0: i32, %arg1: i32) -> (i32, i32) {
    %c0_i32 = arith.constant 0 : i32
    %c0_i32_0 = arith.constant 0 : i32
    return %arg0, %c0_i32 : i32, i32
  }
  func.func @transform_1(%arg0: i32, %arg1: i32) -> (i32, i32) {
    %c0_i32 = arith.constant 0 : i32
    %c0_i32_0 = arith.constant 0 : i32
    return %c0_i32, %arg1 : i32, i32
  }
  func.func @transform_2(%arg0: i32, %arg1: i32) -> (i32, i32) {
    %c0_i32 = arith.constant 0 : i32
    %c0_i32_0 = arith.constant 0 : i32
    return %c0_i32, %arg1 : i32, i32
  }
  func.func @transform_3(%arg0: i32, %arg1: i32) -> (i32, i32) {
    %c0_i32 = arith.constant 0 : i32
    return %arg0, %arg1 : i32, i32
  }
}

</mosaic_0001>

<bundles_post_ra>
// kernel: time_distributed_conv1x1.1
= control target key start
LH: loop header
LB: loop body
LE: loop exit
PB: predicated region body
PF: predicated region fallthrough
CT: control target
= control target key end

     0   :  { %vm27_vm0 = vcmask 261120   ;;  %s190_s1 = inlined_call_operand.vmem [shape: f32[32,128], index: 1, kind: input, shape index: {}]   ;;  %s191_s0 = inlined_call_operand.vmem [shape: f32[16,32], index: 0, kind: input, shape index: {}]   ;;  %s192_s2 = inlined_call_operand.vmem [shape: f32[1,128], index: 2, kind: input, shape index: {}]   ;;  %s193_s3 = inlined_call_operand.vmem [shape: f32[16,128], index: 3, kind: output, shape index: {}]  }
   0x1   :  { %v16_v0 = vld [vmem:[%s190_s1] sm:$0xff]  ;;  %v17_v1 = vld [vmem:[%s190_s1 + $0x8] sm:$0xff]  ;;  %v18_v2 = vld [vmem:[%s190_s1 + $0x10] sm:$0xff] }
   0x2   :  { %v135_v3 = vpack.c.bf16 %v17_v1, %v16_v0  ;;  %v19_v4 = vld [vmem:[%s190_s1 + $0x18] sm:$0xff]  ;;  %v14_v5 = vld [vmem:[%s191_s0] sm:$0xff]  ;;  %v15_v7 = vld [vmem:[%s191_s0 + $0x8] sm:$0xff] }
   0x3   :  { %v139_v6 = vpack.c.bf16 %v19_v4, %v18_v2  ;;  %132 = vmatprep.mubr.msk.f32.mxu0 %vm27_vm0, %v14_v5  ;;  %v115_v8 = vld [vmem:[%s192_s2] ss:$0 sm:$0xff] }
   0x4   :  { %136 = vmatprep.subr.bf16.mxu0 %v135_v3 }
   0x5   :  { %138 = vmatpush3.bf16.msra.mxu0 %v135_v3 }
   0x6   :  { %140 = vmatprep.subr.bf16.mxu0 %v139_v6 }
   0x9   :  { %142 = vmatpush3.bf16.msra.mxu0 %v139_v6 }
   0xc   :  { %133 = vmatmul.mubr.msk.f32.vlgmr.msra.gmra.mrb[0].mxu0 %vm27_vm0, %v15_v7 }
  0xdf   :  { %v134_v9 = vpop.f32.mrb[0].mxu0 }
  0xe0   :  { %v106_v10 = vadd.f32 %v134_v9, %v115_v8  ;;  %v100_v11 = vpop.f32.mrb[1].mxu0 }
  0xe1   :  { %v101_v12 = vadd.f32 %v115_v8, %v100_v11 }
  0xe2   :  { %110 = vst [vmem:[%s193_s3 + $0x8] sm:$0xff] %v106_v10 }
  0xe3   :  { %109 = vst [vmem:[%s193_s3] sm:$0xff] %v101_v12 }

</bundles_post_ra>
